<compile_context>
chip_gen: v5e
topology: v5e:2x2
jax: 0.10.0
libtpu: 0.0.40
codegen_flags: <defaults>
</compile_context>

<pallas_src>
import functools

import jax
import jax.numpy as jnp
from jax.experimental import pallas as pl
from jax.experimental.pallas import tpu as pltpu


def _round_up(n, m):
    return ((n + m - 1) // m) * m


def playernet_kernel(x_ref, w_ref, b_ref, o_ref):
    # One batch tile: single fused affine map on the MXU, f32 accumulation.
    x = x_ref[...].astype(w_ref.dtype)                               # (TB, Din) -> bf16
    y = jnp.dot(x, w_ref[...], preferred_element_type=jnp.float32)   # (TB, Dout_p) f32
    o_ref[...] = (y + b_ref[...]).astype(o_ref.dtype)                # fused bias add


def prepare_params(w1, b1, w2, b2, param_dtype=jnp.bfloat16):
    """One-time, outside the hot path.

    Takes PyTorch-layout params (w: (out_features, in_features), b: (out,)) and
    collapses the two activation-free Linear layers into a single affine map:
        y = (x @ W1^T + b1) @ W2^T + b2 = x @ (W1^T W2^T) + (b1 @ W2^T + b2)
    Returns (w_fused, b_fused) with w_fused: (d_in, d_out_p) in `param_dtype`
    (bf16 by default, MXU-native) and b_fused: (1, d_out_p) in f32.  Only the
    output lane dim is zero-padded (to a multiple of 128 for unmasked stores);
    d_in stays unpadded.
    """
    d_out = w2.shape[0]
    d_in = w1.shape[1]
    d_out_p = _round_up(d_out, 128)  # pad to 256 on v6e/v7x if MXU-bound at large d_out

    w1f = w1.astype(jnp.float32)
    w2f = w2.astype(jnp.float32)
    w_fused = w1f.T @ w2f.T                                  # (d_in, d_out), f32
    b_fused = b1.astype(jnp.float32) @ w2f.T + b2.astype(jnp.float32)

    w_pad = jnp.zeros((d_in, d_out_p), param_dtype).at[:, :d_out].set(
        w_fused.astype(param_dtype))
    b_pad = jnp.zeros((1, d_out_p), jnp.float32).at[0, :d_out].set(b_fused)
    return (w_pad, b_pad)


@functools.partial(jax.jit, static_argnames=("d_out", "block_b", "use_pallas"))
def playernet_forward(x, params, *, d_out, block_b=1024, use_pallas=None):
    """x: (B, d_in) f32; params: output of prepare_params; returns (B, d_out)."""
    w, b = params
    B, d_in = x.shape
    d_out_p = w.shape[1]

    if use_pallas is None:
        # Tiny problems: XLA's fused dot beats pallas_call fixed overhead.
        use_pallas = B * d_in >= 4096
    if not use_pallas:
        y = jnp.dot(x.astype(w.dtype), w, preferred_element_type=jnp.float32) + b
        return y[:, :d_out].astype(x.dtype)

    # ---- Batch tiling -------------------------------------------------------
    b8 = _round_up(B, 8)
    # v7x megacore: force >= 2 grid steps whenever there is enough batch to
    # split, so ("parallel",) has something to shard across the 2 TensorCores.
    n_steps = max(2 if b8 >= 16 else 1, pl.cdiv(b8, block_b))
    tb = _round_up(pl.cdiv(b8, n_steps), 8)
    n_steps = pl.cdiv(b8, tb)
    b_pad = n_steps * tb                      # waste < 8 rows per grid step
    x_pad = x if b_pad == B else jnp.pad(x, ((0, b_pad - B), (0, 0)))

    out_p = pl.pallas_call(
        playernet_kernel,
        out_shape=jax.ShapeDtypeStruct((b_pad, d_out_p), x.dtype),
        grid=(n_steps,),
        in_specs=[
            # x: streamed per batch tile; last block dim == full d_in (no 128 pad).
            pl.BlockSpec((tb, d_in), lambda i: (i, 0)),
            # Fused weight + bias: tiny, stay resident in VMEM across the grid.
            # (If scaled up on v7x, add pipeline_mode=pl.Buffered(1) here.)
            pl.BlockSpec((d_in, d_out_p), lambda i: (0, 0)),
            pl.BlockSpec((1, d_out_p), lambda i: (0, 0)),
        ],
        out_specs=pl.BlockSpec((tb, d_out_p), lambda i: (i, 0)),
        compiler_params=pltpu.CompilerParams(
            dimension_semantics=("parallel",),  # shard batch tiles across v7x's 2 TCs
        ),
    )(x_pad, w, b)

    # Strip batch / output-lane padding.
    return out_p[:B, :d_out]


def init_linear(key, out_features, in_features):
    # Deterministic PyTorch-style init: U(-1/sqrt(fan_in), 1/sqrt(fan_in)).
    kw, kb = jax.random.split(key)
    bound = 1.0 / (in_features ** 0.5)
    w = jax.random.uniform(kw, (out_features, in_features), jnp.float32,
                           minval=-bound, maxval=bound)
    b = jax.random.uniform(kb, (out_features,), jnp.float32,
                           minval=-bound, maxval=bound)
    return w, b


if __name__ == "__main__":
    input_dim, hidden_dim, output_dim = 16, 32, 8
    batch = 2

    key = jax.random.PRNGKey(0)
    kx, k1, k2 = jax.random.split(key, 3)

    x = jax.random.normal(kx, (batch, input_dim), jnp.float32)
    w1, b1 = init_linear(k1, hidden_dim, input_dim)
    w2, b2 = init_linear(k2, output_dim, hidden_dim)

    # TODO(synk): .save()/device-selection methods of PlayerNet are host-side
    # PyTorch utilities with no kernel equivalent; only forward() is implemented.
    params = prepare_params(w1, b1, w2, b2)  # one-time collapse + pad (bf16 weights)
    out = playernet_forward(x, params, d_out=output_dim, use_pallas=True)
    out = jax.block_until_ready(out)

    # Pure-JAX f32 reference of the original two-layer forward.  The kernel uses
    # bf16 weights / a fused single affine, so the tolerance is bf16-scale.
    ref = (x @ w1.T + b1) @ w2.T + b2
    assert out.shape == (batch, output_dim)
    assert jnp.allclose(out, ref, atol=2e-2, rtol=2e-2)

    print("KERNEL_OK")
</pallas_src>

<mosaic_0001>
module attributes {stable_mosaic.version = 11 : i64} {
  func.func @playernet_kernel(%arg0: i32, %arg1: memref<8x16xf32, #tpu.memory_space<vmem>>, %arg2: memref<16x128xbf16, #tpu.memory_space<vmem>>, %arg3: memref<1x128xf32, #tpu.memory_space<vmem>>, %arg4: memref<8x128xf32, #tpu.memory_space<vmem>>) attributes {dimension_semantics = [#tpu.dimension_semantics<parallel>], iteration_bounds = array<i64: 1>, scalar_prefetch = 0 : i64, scratch_operands = 0 : i64, tpu.core_type = #tpu.core_type<tc>, window_params = [{transform_indices = @transform_0, window_bounds = array<i64: 8, 16>}, {pipeline_mode = #tpu.pipeline_mode<synchronous>, transform_indices = @transform_1, window_bounds = array<i64: 16, 128>}, {pipeline_mode = #tpu.pipeline_mode<synchronous>, transform_indices = @transform_2, window_bounds = array<i64: 1, 128>}, {transform_indices = @transform_3, window_bounds = array<i64: 8, 128>}]} {
    %c0 = arith.constant 0 : index
    %c0_0 = arith.constant 0 : index
    %0 = vector.load %arg1[%c0, %c0_0] : memref<8x16xf32, #tpu.memory_space<vmem>>, vector<8x16xf32>
    %1 = arith.truncf %0 : vector<8x16xf32> to vector<8x16xbf16>
    %c0_1 = arith.constant 0 : index
    %c0_2 = arith.constant 0 : index
    %2 = vector.load %arg2[%c0_1, %c0_2] : memref<16x128xbf16, #tpu.memory_space<vmem>>, vector<16x128xbf16>
    %cst = arith.constant dense<0.000000e+00> : vector<8x128xf32>
    %3 = tpu.matmul %1, %2, %cst {dimension_numbers = #tpu.dot_dimension_numbers<[1], [0], [0], [1], [0, 0, 1, 1], [], []>} : vector<8x16xbf16>, vector<16x128xbf16>, vector<8x128xf32> -> vector<8x128xf32>
    %c0_3 = arith.constant 0 : index
    %c0_4 = arith.constant 0 : index
    %4 = vector.load %arg3[%c0_3, %c0_4] : memref<1x128xf32, #tpu.memory_space<vmem>>, vector<1x128xf32>
    %5 = vector.broadcast %4 : vector<1x128xf32> to vector<8x128xf32>
    %6 = arith.addf %3, %5 : vector<8x128xf32>
    %c0_5 = arith.constant 0 : index
    %c0_6 = arith.constant 0 : index
    %7 = vector.load %arg4[%c0_5, %c0_6] : memref<8x128xf32, #tpu.memory_space<vmem>>, vector<8x128xf32>
    tpu.vector_store %arg4[%c0_5, %c0_6], %6 {strides = array<i32>} : memref<8x128xf32, #tpu.memory_space<vmem>>, vector<8x128xf32>,
    return
  }
  func.func @transform_0(%arg0: i32) -> (i32, i32) {
    %c0_i32 = arith.constant 0 : i32
    %c0_i32_0 = arith.constant 0 : i32
    return %arg0, %c0_i32 : i32, i32
  }
  func.func @transform_1(%arg0: i32) -> (i32, i32) {
    %c0_i32 = arith.constant 0 : i32
    %c0_i32_0 = arith.constant 0 : i32
    %c0_i32_1 = arith.constant 0 : i32
    return %c0_i32, %c0_i32_0 : i32, i32
  }
  func.func @transform_2(%arg0: i32) -> (i32, i32) {
    %c0_i32 = arith.constant 0 : i32
    %c0_i32_0 = arith.constant 0 : i32
    %c0_i32_1 = arith.constant 0 : i32
    return %c0_i32, %c0_i32_0 : i32, i32
  }
  func.func @transform_3(%arg0: i32) -> (i32, i32) {
    %c0_i32 = arith.constant 0 : i32
    %c0_i32_0 = arith.constant 0 : i32
    return %arg0, %c0_i32 : i32, i32
  }
}

</mosaic_0001>

<bundles_post_ra>
// kernel: playernet_forward.1
= control target key start
LH: loop header
LB: loop body
LE: loop exit
PB: predicated region body
PF: predicated region fallthrough
CT: control target
= control target key end

     0   :  { %vm29_vm0 = vcmask 130048   ;;  %s90_s1 = inlined_call_operand.vmem [shape: bf16[16,128], index: 1, kind: input, shape index: {}]   ;;  %s91_s0 = inlined_call_operand.vmem [shape: f32[8,16], index: 0, kind: input, shape index: {}]   ;;  %s92_s2 = inlined_call_operand.vmem [shape: f32[1,128], index: 2, kind: input, shape index: {}]   ;;  %s93_s3 = inlined_call_operand.vmem [shape: f32[8,128], index: 3, kind: output, shape index: {}]  }
   0x1   :  { %v56_v0 = vld [vmem:[%s90_s1] sm:$0xff] }
   0x2   :  { %v15_v1 = vld [vmem:[%s91_s0] sm:$0xff]  ;;  %40 = vmatpush.bf16.msra.mxu0 %v56_v0 }
   0x3   :  { %v16_v2 = vpack.c.bf16 %v15_v1, %v15_v1  ;;  %v57_v3 = vld [vmem:[%s92_s2] ss:$0 sm:$0xff] }
   0x5   :  { %55 = vmatmul.msk.bf16.vlgmr.msra.gmra.mxu0 %vm29_vm0, %v16_v2 }
  0x82   :  { %v42_v4 = vpop.f32.mrf.mxu0 }
  0x83   :  { %v43_v5 = vadd.f32 %v57_v3, %v42_v4 }
  0x85   :  { %46 = vst [vmem:[%s93_s3] sm:$0xff] %v43_v5 }
  0x8a   :  { %v44_v6 = vpop.f32.mrf.mxu0 }

</bundles_post_ra>
